<compile_context>
chip_gen: v7x
topology: tpu7x:2x2x1
jax: 0.10.0
libtpu: 0.0.40
codegen_flags: <defaults>
</compile_context>

<pallas_src>
from functools import partial

import numpy as np
import jax
import jax.numpy as jnp
from jax.experimental import pallas as pl
from jax.experimental.pallas import tpu as pltpu

# ---- model / shape constants (dictated by the module) ----
B = 2
ZDIM = 100                      # latent channels
C1 = 64                         # hidden channels
K1, S1, P1 = 4, 1, 0            # ConvTranspose2d #1
H1 = W1 = 4                     # hidden spatial: (1-1)*1 - 0 + 4 = 4
C2 = 1                          # output channels
K2, S2, P2 = 4, 2, 1            # ConvTranspose2d #2
H2 = W2 = 8                     # output spatial: (4-1)*2 - 2 + 4 = 8
BN_EPS = 1e-5

ZPAD = 128                      # latent padded to lane multiple
HID = C1 * H1 * W1              # 1024 = flattened hidden activation (oc, y, x)
NOUT = H2 * W2                  # 64  = flattened output pixels
OUTPAD = 128                    # output pixels padded to lane multiple


def gen_kernel(z_ref, w1_ref, scale_ref, shift_ref, w2_ref, out_ref):
    """Single grid step covering the whole batch.

    z_ref     : (B, 128)     latent, zero-padded 100 -> 128
    w1_ref    : (128, 1024)  ConvT1 as matmul (latent, oc*4*4), zero-padded rows
    scale_ref : (1, 1024)    folded BatchNorm scale, broadcast over (oc, 4, 4) flatten
    shift_ref : (1, 1024)    folded BatchNorm shift, same layout
    w2_ref    : (1024, 128)  ConvT2 scatter matrix (oc*4*4, 8*8), zero-padded cols
    out_ref   : (B, 128)     tanh(image) flattened over 8*8, padded cols are tanh(0)=0
    """
    # ConvTranspose2d(100 -> 64, 4, 1, 0) on a 1x1 input == one MXU matmul.
    h = jnp.dot(z_ref[...], w1_ref[...], preferred_element_type=jnp.float32)   # (B, 1024)
    # BatchNorm2d (eval, folded) + ReLU, fused elementwise on the lane-dense tile.
    h = h * scale_ref[...] + shift_ref[...]
    h = jnp.maximum(h, 0.0)
    # ConvTranspose2d(64 -> 1, 4, 2, 1) folded into a second MXU matmul.
    y = jnp.dot(h, w2_ref[...], preferred_element_type=jnp.float32)            # (B, 128)
    out_ref[...] = jnp.tanh(y)


def _convt2_scatter_mat(w2):
    """Build (C1*H1*W1, H2*W2) matrix implementing ConvTranspose2d(64, 1, 4, 2, 1).

    out[y, x] += h[c, i, j] * W2[c, 0, ky, kx]  where  y = 2*i - 1 + ky,  x = 2*j - 1 + kx.
    Connectivity (k_idx / k_msk) is computed once in numpy at trace time.
    """
    k_idx = np.zeros((H1 * W1, NOUT), dtype=np.int32)
    k_msk = np.zeros((H1 * W1, NOUT), dtype=np.float32)
    for i in range(H1):
        for j in range(W1):
            for y in range(H2):
                for x in range(W2):
                    ky = y - S2 * i + P2
                    kx = x - S2 * j + P2
                    if 0 <= ky < K2 and 0 <= kx < K2:
                        k_idx[i * W1 + j, y * W2 + x] = ky * K2 + kx
                        k_msk[i * W1 + j, y * W2 + x] = 1.0
    w2_pc = w2[:, 0].reshape(C1, K2 * K2)                      # (64, 16) per-channel kernels
    mat = w2_pc[:, k_idx] * jnp.asarray(k_msk)[None]           # (64, 16, 64)
    return mat.reshape(C1 * H1 * W1, NOUT)                     # (1024, 64), row = c*16 + i*4 + j


@jax.jit
def generator_forward(z, w1, w2, gamma, beta, rmean, rvar):
    """z: (B, 100, 1, 1) float32.  Returns (B, 1, 8, 8) float32 in (-1, 1)."""
    # ---- glue: latent as a lane-padded matrix ----
    z2 = z.reshape(B, ZDIM).astype(jnp.float32)
    z_pad = jnp.pad(z2, ((0, 0), (0, ZPAD - ZDIM)))                        # (B, 128)

    # ---- glue: weight / BN re-layout (cheap, fused into the same jit) ----
    w1_mat = w1.reshape(ZDIM, HID).astype(jnp.float32)                     # (100, 1024)
    w1_pad = jnp.pad(w1_mat, ((0, ZPAD - ZDIM), (0, 0)))                   # (128, 1024)

    scale = (gamma / jnp.sqrt(rvar + BN_EPS)).astype(jnp.float32)          # (64,)
    shift = (beta - rmean * scale).astype(jnp.float32)                     # (64,)
    scale_flat = jnp.repeat(scale, H1 * W1)[None, :]                       # (1, 1024)
    shift_flat = jnp.repeat(shift, H1 * W1)[None, :]                       # (1, 1024)

    w2_mat = _convt2_scatter_mat(w2.astype(jnp.float32))                   # (1024, 64)
    w2_pad = jnp.pad(w2_mat, ((0, 0), (0, OUTPAD - NOUT)))                 # (1024, 128)

    out = pl.pallas_call(
        gen_kernel,
        grid=(1,),                                                         # whole batch, one step
        in_specs=[
            pl.BlockSpec((B, ZPAD), lambda i: (0, 0)),
            pl.BlockSpec((ZPAD, HID), lambda i: (0, 0)),
            pl.BlockSpec((1, HID), lambda i: (0, 0)),
            pl.BlockSpec((1, HID), lambda i: (0, 0)),
            pl.BlockSpec((HID, OUTPAD), lambda i: (0, 0)),
        ],
        out_specs=pl.BlockSpec((B, OUTPAD), lambda i: (0, 0)),
        out_shape=jax.ShapeDtypeStruct((B, OUTPAD), jnp.float32),
        compiler_params=pltpu.CompilerParams(
            dimension_semantics=("arbitrary",)),
    )(z_pad, w1_pad, scale_flat, shift_flat, w2_pad)

    return out[:, :NOUT].reshape(B, C2, H2, W2)


# ------------------------- pure-JAX reference -------------------------
def _conv_transpose_ref(x, wt, stride, pad):
    """PyTorch-style ConvTranspose2d (wt: (C_in, C_out, KH, KW), no bias)."""
    k = wt.shape[2]
    w = jnp.flip(wt, axis=(2, 3)).transpose(1, 0, 2, 3)                    # (C_out, C_in, k, k)
    return jax.lax.conv_general_dilated(
        x, w, window_strides=(1, 1),
        padding=((k - 1 - pad,) * 2, (k - 1 - pad,) * 2),
        lhs_dilation=(stride, stride),
        dimension_numbers=("NCHW", "OIHW", "NCHW"),
        precision=jax.lax.Precision.HIGHEST)


def reference_forward(z, w1, w2, gamma, beta, rmean, rvar):
    y = _conv_transpose_ref(z, w1, S1, P1)                                 # (B, 64, 4, 4)
    y = (y - rmean[None, :, None, None]) / jnp.sqrt(rvar[None, :, None, None] + BN_EPS)
    y = y * gamma[None, :, None, None] + beta[None, :, None, None]
    y = jnp.maximum(y, 0.0)
    y = _conv_transpose_ref(y, w2, S2, P2)                                 # (B, 1, 8, 8)
    return jnp.tanh(y)


if __name__ == "__main__":
    key = jax.random.PRNGKey(0)
    k_z, k_w1, k_w2, k_g, k_b, k_m, k_v = jax.random.split(key, 7)

    # Deterministic synthetic inputs / DCGAN-style 0.02-std weight init.
    z = jax.random.normal(k_z, (B, ZDIM, 1, 1), dtype=jnp.float32)
    w1 = 0.02 * jax.random.normal(k_w1, (ZDIM, C1, K1, K1), dtype=jnp.float32)
    w2 = 0.02 * jax.random.normal(k_w2, (C1, C2, K2, K2), dtype=jnp.float32)
    gamma = 1.0 + 0.1 * jax.random.normal(k_g, (C1,), dtype=jnp.float32)
    beta = 0.1 * jax.random.normal(k_b, (C1,), dtype=jnp.float32)
    rmean = 0.1 * jax.random.normal(k_m, (C1,), dtype=jnp.float32)
    rvar = jax.random.uniform(k_v, (C1,), minval=0.5, maxval=1.5, dtype=jnp.float32)

    out = jax.block_until_ready(generator_forward(z, w1, w2, gamma, beta, rmean, rvar))
    ref = jax.block_until_ready(reference_forward(z, w1, w2, gamma, beta, rmean, rvar))

    assert out.shape == (B, C2, H2, W2), out.shape
    assert jnp.allclose(out, ref, atol=2e-4, rtol=2e-4), (
        float(jnp.max(jnp.abs(out - ref))))

    print("KERNEL_OK")
</pallas_src>

<mosaic_0001>
module attributes {stable_mosaic.version = 11 : i64} {
  func.func @gen_kernel(%arg0: i32, %arg1: memref<2x128xf32, #tpu.memory_space<vmem>>, %arg2: memref<128x1024xf32, #tpu.memory_space<vmem>>, %arg3: memref<1x1024xf32, #tpu.memory_space<vmem>>, %arg4: memref<1x1024xf32, #tpu.memory_space<vmem>>, %arg5: memref<1024x128xf32, #tpu.memory_space<vmem>>, %arg6: memref<2x128xf32, #tpu.memory_space<vmem>>) attributes {dimension_semantics = [#tpu.dimension_semantics<arbitrary>], iteration_bounds = array<i64: 1>, scalar_prefetch = 0 : i64, scratch_operands = 0 : i64, tpu.core_type = #tpu.core_type<tc>, window_params = [{pipeline_mode = #tpu.pipeline_mode<synchronous>, transform_indices = @transform_0, window_bounds = array<i64: 2, 128>}, {pipeline_mode = #tpu.pipeline_mode<synchronous>, transform_indices = @transform_1, window_bounds = array<i64: 128, 1024>}, {pipeline_mode = #tpu.pipeline_mode<synchronous>, transform_indices = @transform_2, window_bounds = array<i64: 1, 1024>}, {pipeline_mode = #tpu.pipeline_mode<synchronous>, transform_indices = @transform_3, window_bounds = array<i64: 1, 1024>}, {pipeline_mode = #tpu.pipeline_mode<synchronous>, transform_indices = @transform_4, window_bounds = array<i64: 1024, 128>}, {pipeline_mode = #tpu.pipeline_mode<synchronous>, transform_indices = @transform_5, window_bounds = array<i64: 2, 128>}]} {
    %c0 = arith.constant 0 : index
    %c0_0 = arith.constant 0 : index
    %0 = vector.load %arg1[%c0, %c0_0] : memref<2x128xf32, #tpu.memory_space<vmem>>, vector<2x128xf32>
    %c0_1 = arith.constant 0 : index
    %c0_2 = arith.constant 0 : index
    %1 = vector.load %arg2[%c0_1, %c0_2] : memref<128x1024xf32, #tpu.memory_space<vmem>>, vector<128x1024xf32>
    %cst = arith.constant dense<0.000000e+00> : vector<2x1024xf32>
    %2 = tpu.matmul %0, %1, %cst {dimension_numbers = #tpu.dot_dimension_numbers<[1], [0], [0], [1], [0, 0, 1, 1], [], []>} : vector<2x128xf32>, vector<128x1024xf32>, vector<2x1024xf32> -> vector<2x1024xf32>
    %c0_3 = arith.constant 0 : index
    %c0_4 = arith.constant 0 : index
    %3 = vector.load %arg3[%c0_3, %c0_4] : memref<1x1024xf32, #tpu.memory_space<vmem>>, vector<1x1024xf32>
    %4 = vector.broadcast %3 : vector<1x1024xf32> to vector<2x1024xf32>
    %5 = arith.mulf %2, %4 : vector<2x1024xf32>
    %c0_5 = arith.constant 0 : index
    %c0_6 = arith.constant 0 : index
    %6 = vector.load %arg4[%c0_5, %c0_6] : memref<1x1024xf32, #tpu.memory_space<vmem>>, vector<1x1024xf32>
    %7 = vector.broadcast %6 : vector<1x1024xf32> to vector<2x1024xf32>
    %8 = arith.addf %5, %7 : vector<2x1024xf32>
    %cst_7 = arith.constant 0.000000e+00 : f32
    %9 = vector.broadcast %cst_7 : f32 to vector<2x1024xf32>
    %10 = arith.maximumf %8, %9 : vector<2x1024xf32>
    %c0_8 = arith.constant 0 : index
    %c0_9 = arith.constant 0 : index
    %11 = vector.load %arg5[%c0_8, %c0_9] : memref<1024x128xf32, #tpu.memory_space<vmem>>, vector<1024x128xf32>
    %cst_10 = arith.constant dense<0.000000e+00> : vector<2x128xf32>
    %12 = tpu.matmul %10, %11, %cst_10 {dimension_numbers = #tpu.dot_dimension_numbers<[1], [0], [0], [1], [0, 0, 1, 1], [], []>} : vector<2x1024xf32>, vector<1024x128xf32>, vector<2x128xf32> -> vector<2x128xf32>
    %13 = math.tanh %12 : vector<2x128xf32>
    %c0_11 = arith.constant 0 : index
    %c0_12 = arith.constant 0 : index
    %14 = vector.load %arg6[%c0_11, %c0_12] : memref<2x128xf32, #tpu.memory_space<vmem>>, vector<2x128xf32>
    tpu.vector_store %arg6[%c0_11, %c0_12], %13 {strides = array<i32>} : memref<2x128xf32, #tpu.memory_space<vmem>>, vector<2x128xf32>,
    return
  }
  func.func @transform_0(%arg0: i32) -> (i32, i32) {
    %c0_i32 = arith.constant 0 : i32
    %c0_i32_0 = arith.constant 0 : i32
    %c0_i32_1 = arith.constant 0 : i32
    return %c0_i32, %c0_i32_0 : i32, i32
  }
  func.func @transform_1(%arg0: i32) -> (i32, i32) {
    %c0_i32 = arith.constant 0 : i32
    %c0_i32_0 = arith.constant 0 : i32
    %c0_i32_1 = arith.constant 0 : i32
    return %c0_i32, %c0_i32_0 : i32, i32
  }
  func.func @transform_2(%arg0: i32) -> (i32, i32) {
    %c0_i32 = arith.constant 0 : i32
    %c0_i32_0 = arith.constant 0 : i32
    %c0_i32_1 = arith.constant 0 : i32
    return %c0_i32, %c0_i32_0 : i32, i32
  }
  func.func @transform_3(%arg0: i32) -> (i32, i32) {
    %c0_i32 = arith.constant 0 : i32
    %c0_i32_0 = arith.constant 0 : i32
    %c0_i32_1 = arith.constant 0 : i32
    return %c0_i32, %c0_i32_0 : i32, i32
  }
  func.func @transform_4(%arg0: i32) -> (i32, i32) {
    %c0_i32 = arith.constant 0 : i32
    %c0_i32_0 = arith.constant 0 : i32
    %c0_i32_1 = arith.constant 0 : i32
    return %c0_i32, %c0_i32_0 : i32, i32
  }
  func.func @transform_5(%arg0: i32) -> (i32, i32) {
    %c0_i32 = arith.constant 0 : i32
    %c0_i32_0 = arith.constant 0 : i32
    %c0_i32_1 = arith.constant 0 : i32
    return %c0_i32, %c0_i32_0 : i32, i32
  }
}

</mosaic_0001>

<bundles_post_ra>
// kernel: generator_forward.1
= control target key start
LH: loop header
LB: loop body
LE: loop exit
PB: predicated region body
PF: predicated region fallthrough
CT: control target
= control target key end

     0   :  { %v1354_v3 = vmov 0.0   ;;  %s2205_s1 = inlined_call_operand.vmem [shape: f32[128,1024], index: 1, kind: input, shape index: {}]   ;;  %s2206_s0 = inlined_call_operand.vmem [shape: f32[2,128], index: 0, kind: input, shape index: {}]   ;;  %s2207_s4 = inlined_call_operand.vmem [shape: f32[1024,128], index: 4, kind: input, shape index: {}]   ;;  %s2208_s2 = inlined_call_operand.vmem [shape: f32[1,1024], index: 2, kind: input, shape index: {}]   ;;  %s2209_s3 = inlined_call_operand.vmem [shape: f32[1,1024], index: 3, kind: input, shape index: {}]   ;;  %s2210_s5 = inlined_call_operand.vmem [shape: f32[2,128], index: 5, kind: output, shape index: {}]  }
   0x1   :  { %v22_v0 = vld [vmem:[%s2205_s1 + $0x8] sm:$0xff]  ;;  %v24_v2 = vld [vmem:[%s2205_s1 + $0x18] sm:$0xff]  ;;  %213 = vmatprep.mubr.f32.mxu0 %v1354_v3  ;;  %284 = vmatprep.mubr.f32.mxu1 %v1354_v3  ;;  %v21_v6 = vld [vmem:[%s2205_s1] sm:$0xff] }
   0x2   :  { %v30_v1 = vld [vmem:[%s2205_s1 + $0x48] sm:$0xff]  ;;  %v32_v5 = vld [vmem:[%s2205_s1 + $0x58] sm:$0xff]  ;;  %v29_v7 = vld [vmem:[%s2205_s1 + $0x40] sm:$0xff] }
   0x3   :  { %v1095_v4 = vpack.c.bf16 %v30_v1, %v22_v0  ;;  %v1127_v8 = vpack.c.bf16 %v32_v5, %v24_v2  ;;  %v1097_v9 = vpack.c.bf16 %v29_v7, %v21_v6  ;;  %v23_v10 = vld [vmem:[%s2205_s1 + $0x10] sm:$0xff]  ;;  %v38_v12 = vld [vmem:[%s2205_s1 + $0x88] sm:$0xff]  ;;  %v40_v15 = vld [vmem:[%s2205_s1 + $0x98] sm:$0xff] }
   0x4   :  { %v31_v11 = vld [vmem:[%s2205_s1 + $0x50] sm:$0xff]  ;;  %v46_v14 = vld [vmem:[%s2205_s1 + $0xc8] sm:$0xff]  ;;  %v48_v16 = vld [vmem:[%s2205_s1 + $0xd8] sm:$0xff] }
   0x5   :  { %1096 = vmatprep.subr.bf16.mxu0 %v1095_v4  ;;  %v1129_v13 = vpack.c.bf16 %v31_v11, %v23_v10  ;;  %1128 = vmatprep.subr.bf16.mxu1 %v1127_v8  ;;  %v1099_v17 = vpack.c.bf16 %v46_v14, %v38_v12  ;;  %v1131_v18 = vpack.c.bf16 %v48_v16, %v40_v15  ;;  %v37_v19 = vld [vmem:[%s2205_s1 + $0x80] sm:$0xff]  ;;  %v39_v21 = vld [vmem:[%s2205_s1 + $0x90] sm:$0xff]  ;;  %v54_v24 = vld [vmem:[%s2205_s1 + $0x108] sm:$0xff] }
   0x6   :  { %1098 = vmatpush1.bf16.msra.mxu0 %v1097_v9  ;;  %v45_v20 = vld [vmem:[%s2205_s1 + $0xc0] sm:$0xff]  ;;  %v47_v23 = vld [vmem:[%s2205_s1 + $0xd0] sm:$0xff]  ;;  %v62_v25 = vld [vmem:[%s2205_s1 + $0x148] sm:$0xff] }
   0x7   :  { %1130 = vmatpush1.bf16.msra.mxu1 %v1129_v13  ;;  %v1101_v22 = vpack.c.bf16 %v45_v20, %v37_v19  ;;  %1100 = vmatprep.subr.bf16.mxu0 %v1099_v17  ;;  %v1133_v26 = vpack.c.bf16 %v47_v23, %v39_v21  ;;  %v1103_v27 = vpack.c.bf16 %v62_v25, %v54_v24  ;;  %v56_v28 = vld [vmem:[%s2205_s1 + $0x118] sm:$0xff]  ;;  %v53_v30 = vld [vmem:[%s2205_s1 + $0x100] sm:$0xff]  ;;  %v55_v33 = vld [vmem:[%s2205_s1 + $0x110] sm:$0xff] }
   0x8   :  { %1132 = vmatprep.subr.bf16.mxu1 %v1131_v18  ;;  %v64_v29 = vld [vmem:[%s2205_s1 + $0x158] sm:$0xff]  ;;  %v61_v32 = vld [vmem:[%s2205_s1 + $0x140] sm:$0xff]  ;;  %v63_v34 = vld [vmem:[%s2205_s1 + $0x150] sm:$0xff] }
   0x9   :  { %v1135_v31 = vpack.c.bf16 %v64_v29, %v56_v28  ;;  %v1105_v35 = vpack.c.bf16 %v61_v32, %v53_v30  ;;  %v70_v36 = vld [vmem:[%s2205_s1 + $0x188] sm:$0xff]  ;;  %v72_v38 = vld [vmem:[%s2205_s1 + $0x198] sm:$0xff]  ;;  %v1137_v39 = vpack.c.bf16 %v63_v34, %v55_v33  ;;  %v69_v42 = vld [vmem:[%s2205_s1 + $0x180] sm:$0xff] }
   0xa   :  { %1102 = vmatpush1.bf16.msra.mxu0 %v1101_v22  ;;  %v78_v37 = vld [vmem:[%s2205_s1 + $0x1c8] sm:$0xff]  ;;  %v80_v41 = vld [vmem:[%s2205_s1 + $0x1d8] sm:$0xff]  ;;  %v77_v43 = vld [vmem:[%s2205_s1 + $0x1c0] sm:$0xff] }
   0xb   :  { %1134 = vmatpush1.bf16.msra.mxu1 %v1133_v26  ;;  %1104 = vmatprep.subr.bf16.mxu0 %v1103_v27  ;;  %v1107_v40 = vpack.c.bf16 %v78_v37, %v70_v36  ;;  %v1139_v44 = vpack.c.bf16 %v80_v41, %v72_v38  ;;  %v71_v45 = vld [vmem:[%s2205_s1 + $0x190] sm:$0xff]  ;;  %v86_v47 = vld [vmem:[%s2205_s1 + $0x208] sm:$0xff]  ;;  %v88_v49 = vld [vmem:[%s2205_s1 + $0x218] sm:$0xff]  ;;  %v1109_v51 = vpack.c.bf16 %v77_v43, %v69_v42 }
   0xc   :  { %1136 = vmatprep.subr.bf16.mxu1 %v1135_v31  ;;  %v79_v46 = vld [vmem:[%s2205_s1 + $0x1d0] sm:$0xff]  ;;  %v94_v48 = vld [vmem:[%s2205_s1 + $0x248] sm:$0xff]  ;;  %v96_v50 = vld [vmem:[%s2205_s1 + $0x258] sm:$0xff] }
   0xd   :  { %v1141_v52 = vpack.c.bf16 %v79_v46, %v71_v45  ;;  %v1111_v53 = vpack.c.bf16 %v94_v48, %v86_v47  ;;  %v85_v54 = vld [vmem:[%s2205_s1 + $0x200] sm:$0xff]  ;;  %v87_v56 = vld [vmem:[%s2205_s1 + $0x210] sm:$0xff]  ;;  %v1143_v57 = vpack.c.bf16 %v96_v50, %v88_v49  ;;  %v102_v59 = vld [vmem:[%s2205_s1 + $0x288] sm:$0xff] }
   0xe   :  { %1106 = vmatpush1.bf16.msra.mxu0 %v1105_v35  ;;  %v93_v55 = vld [vmem:[%s2205_s1 + $0x240] sm:$0xff]  ;;  %v95_v58 = vld [vmem:[%s2205_s1 + $0x250] sm:$0xff]  ;;  %v110_v60 = vld [vmem:[%s2205_s1 + $0x2c8] sm:$0xff] }
   0xf   :  { %1138 = vmatpush1.bf16.msra.mxu1 %v1137_v39  ;;  %1108 = vmatprep.subr.bf16.mxu0 %v1107_v40  ;;  %v104_v61 = vld [vmem:[%s2205_s1 + $0x298] sm:$0xff]  ;;  %v1113_v63 = vpack.c.bf16 %v93_v55, %v85_v54  ;;  %v1145_v0 = vpack.c.bf16 %v95_v58, %v87_v56  ;;  %v1115_v1 = vpack.c.bf16 %v110_v60, %v102_v59  ;;  %v101_v2 = vld [vmem:[%s2205_s1 + $0x280] sm:$0xff]  ;;  %v103_v5 = vld [vmem:[%s2205_s1 + $0x290] sm:$0xff] }
  0x10   :  { %1140 = vmatprep.subr.bf16.mxu1 %v1139_v44  ;;  %v112_v62 = vld [vmem:[%s2205_s1 + $0x2d8] sm:$0xff]  ;;  %v109_v4 = vld [vmem:[%s2205_s1 + $0x2c0] sm:$0xff]  ;;  %v111_v7 = vld [vmem:[%s2205_s1 + $0x2d0] sm:$0xff] }
  0x11   :  { %v1147_v6 = vpack.c.bf16 %v112_v62, %v104_v61  ;;  %v118_v8 = vld [vmem:[%s2205_s1 + $0x308] sm:$0xff]  ;;  %v120_v10 = vld [vmem:[%s2205_s1 + $0x318] sm:$0xff]  ;;  %v1117_v12 = vpack.c.bf16 %v109_v4, %v101_v2  ;;  %v1149_v13 = vpack.c.bf16 %v111_v7, %v103_v5  ;;  %v117_v15 = vld [vmem:[%s2205_s1 + $0x300] sm:$0xff] }
  0x12   :  { %1110 = vmatpush1.bf16.msra.mxu0 %v1109_v51  ;;  %v126_v9 = vld [vmem:[%s2205_s1 + $0x348] sm:$0xff]  ;;  %v128_v11 = vld [vmem:[%s2205_s1 + $0x358] sm:$0xff]  ;;  %v125_v16 = vld [vmem:[%s2205_s1 + $0x340] sm:$0xff] }
  0x13   :  { %1142 = vmatpush1.bf16.msra.mxu1 %v1141_v52  ;;  %1112 = vmatprep.subr.bf16.mxu0 %v1111_v53  ;;  %v1119_v14 = vpack.c.bf16 %v126_v9, %v118_v8  ;;  %v119_v17 = vld [vmem:[%s2205_s1 + $0x310] sm:$0xff]  ;;  %v1151_v18 = vpack.c.bf16 %v128_v11, %v120_v10  ;;  %v134_v20 = vld [vmem:[%s2205_s1 + $0x388] sm:$0xff]  ;;  %v136_v22 = vld [vmem:[%s2205_s1 + $0x398] sm:$0xff]  ;;  %v1121_v24 = vpack.c.bf16 %v125_v16, %v117_v15 }
  0x14   :  { %1144 = vmatprep.subr.bf16.mxu1 %v1143_v57  ;;  %v127_v19 = vld [vmem:[%s2205_s1 + $0x350] sm:$0xff]  ;;  %v142_v21 = vld [vmem:[%s2205_s1 + $0x3c8] sm:$0xff]  ;;  %v144_v23 = vld [vmem:[%s2205_s1 + $0x3d8] sm:$0xff] }
  0x15   :  { %v1153_v25 = vpack.c.bf16 %v127_v19, %v119_v17  ;;  %v1123_v26 = vpack.c.bf16 %v142_v21, %v134_v20  ;;  %v133_v27 = vld [vmem:[%s2205_s1 + $0x380] sm:$0xff]  ;;  %v135_v29 = vld [vmem:[%s2205_s1 + $0x390] sm:$0xff]  ;;  %v1155_v30 = vpack.c.bf16 %v144_v23, %v136_v22  ;;  %v26_v32 = vld [vmem:[%s2205_s1 + $0x28] sm:$0xff] }
  0x16   :  { %1114 = vmatpush1.bf16.msra.mxu0 %v1113_v63  ;;  %v141_v28 = vld [vmem:[%s2205_s1 + $0x3c0] sm:$0xff]  ;;  %v143_v31 = vld [vmem:[%s2205_s1 + $0x3d0] sm:$0xff]  ;;  %v34_v33 = vld [vmem:[%s2205_s1 + $0x68] sm:$0xff] }
  0x17   :  { %1146 = vmatpush1.bf16.msra.mxu1 %v1145_v0  ;;  %1116 = vmatprep.subr.bf16.mxu0 %v1115_v1  ;;  %v28_v34 = vld [vmem:[%s2205_s1 + $0x38] sm:$0xff]  ;;  %v1125_v36 = vpack.c.bf16 %v141_v28, %v133_v27  ;;  %v1157_v37 = vpack.c.bf16 %v143_v31, %v135_v29  ;;  %v1159_v38 = vpack.c.bf16 %v34_v33, %v26_v32  ;;  %v25_v39 = vld [vmem:[%s2205_s1 + $0x20] sm:$0xff]  ;;  %v27_v41 = vld [vmem:[%s2205_s1 + $0x30] sm:$0xff] }
  0x18   :  { %1148 = vmatprep.subr.bf16.mxu1 %v1147_v6  ;;  %v36_v35 = vld [vmem:[%s2205_s1 + $0x78] sm:$0xff]  ;;  %v33_v40 = vld [vmem:[%s2205_s1 + $0x60] sm:$0xff]  ;;  %v35_v43 = vld [vmem:[%s2205_s1 + $0x70] sm:$0xff] }
  0x19   :  { %v1191_v42 = vpack.c.bf16 %v36_v35, %v28_v34  ;;  %v42_v44 = vld [vmem:[%s2205_s1 + $0xa8] sm:$0xff]  ;;  %v44_v46 = vld [vmem:[%s2205_s1 + $0xb8] sm:$0xff]  ;;  %v1618_v48 = vld [vmem:[%s2206_s0] sm:$0x3]  ;;  %v1161_v49 = vpack.c.bf16 %v33_v40, %v25_v39  ;;  %v1193_v50 = vpack.c.bf16 %v35_v43, %v27_v41 }
  0x1a   :  { %1118 = vmatpush1.bf16.msra.mxu0 %v1117_v12  ;;  %v50_v45 = vld [vmem:[%s2205_s1 + $0xe8] sm:$0xff]  ;;  %v52_v47 = vld [vmem:[%s2205_s1 + $0xf8] sm:$0xff]  ;;  %v41_v52 = vld [vmem:[%s2205_s1 + $0xa0] sm:$0xff] }
  0x1b   :  { %1150 = vmatpush1.bf16.msra.mxu1 %v1149_v13  ;;  %1120 = vmatprep.subr.bf16.mxu0 %v1119_v14  ;;  %v1163_v51 = vpack.c.bf16 %v50_v45, %v42_v44  ;;  %v49_v53 = vld [vmem:[%s2205_s1 + $0xe0] sm:$0xff]  ;;  %v43_v54 = vld [vmem:[%s2205_s1 + $0xb0] sm:$0xff]  ;;  %v1195_v55 = vpack.c.bf16 %v52_v47, %v44_v46  ;;  %v58_v57 = vld [vmem:[%s2205_s1 + $0x128] sm:$0xff] }
  0x1c   :  { %1152 = vmatprep.subr.bf16.mxu1 %v1151_v18  ;;  %v51_v56 = vld [vmem:[%s2205_s1 + $0xf0] sm:$0xff]  ;;  %v66_v58 = vld [vmem:[%s2205_s1 + $0x168] sm:$0xff]  ;;  %v60_v59 = vld [vmem:[%s2205_s1 + $0x138] sm:$0xff]  ;;  %v1165_v61 = vpack.c.bf16 %v49_v53, %v41_v52 }
  0x1d   :  { %v68_v60 = vld [vmem:[%s2205_s1 + $0x178] sm:$0xff]  ;;  %v1197_v62 = vpack.c.bf16 %v51_v56, %v43_v54  ;;  %v1167_v63 = vpack.c.bf16 %v66_v58, %v58_v57  ;;  %v57_v0 = vld [vmem:[%s2205_s1 + $0x120] sm:$0xff]  ;;  %v59_v2 = vld [vmem:[%s2205_s1 + $0x130] sm:$0xff] }
  0x1e   :  { %1122 = vmatpush1.bf16.msra.mxu0 %v1121_v24  ;;  %v65_v1 = vld [vmem:[%s2205_s1 + $0x160] sm:$0xff]  ;;  %v1199_v4 = vpack.c.bf16 %v68_v60, %v60_v59  ;;  %v67_v5 = vld [vmem:[%s2205_s1 + $0x170] sm:$0xff]  ;;  %v74_v6 = vld [vmem:[%s2205_s1 + $0x1a8] sm:$0xff] }
  0x1f   :  { %1154 = vmatpush1.bf16.msra.mxu1 %v1153_v25  ;;  %1124 = vmatprep.subr.bf16.mxu0 %v1123_v26  ;;  %v82_v7 = vld [vmem:[%s2205_s1 + $0x1e8] sm:$0xff]  ;;  %v76_v8 = vld [vmem:[%s2205_s1 + $0x1b8] sm:$0xff]  ;;  %v1169_v10 = vpack.c.bf16 %v65_v1, %v57_v0  ;;  %v1201_v11 = vpack.c.bf16 %v67_v5, %v59_v2  ;;  %v73_v13 = vld [vmem:[%s2205_s1 + $0x1a0] sm:$0xff] }
  0x20   :  { %1156 = vmatprep.subr.bf16.mxu1 %v1155_v30  ;;  %v84_v9 = vld [vmem:[%s2205_s1 + $0x1f8] sm:$0xff]  ;;  %v1171_v12 = vpack.c.bf16 %v82_v7, %v74_v6  ;;  %v81_v14 = vld [vmem:[%s2205_s1 + $0x1e0] sm:$0xff]  ;;  %v75_v15 = vld [vmem:[%s2205_s1 + $0x1b0] sm:$0xff] }
  0x21   :  { %v83_v16 = vld [vmem:[%s2205_s1 + $0x1f0] sm:$0xff]  ;;  %v90_v17 = vld [vmem:[%s2205_s1 + $0x228] sm:$0xff]  ;;  %v92_v19 = vld [vmem:[%s2205_s1 + $0x238] sm:$0xff]  ;;  %v1173_v21 = vpack.c.bf16 %v81_v14, %v73_v13 }
  0x22   :  { %1126 = vmatpush1.bf16.msra.mxu0 %v1125_v36  ;;  %v98_v18 = vld [vmem:[%s2205_s1 + $0x268] sm:$0xff]  ;;  %v100_v20 = vld [vmem:[%s2205_s1 + $0x278] sm:$0xff]  ;;  %v1205_v22 = vpack.c.bf16 %v83_v16, %v75_v15  ;;  %v89_v24 = vld [vmem:[%s2205_s1 + $0x220] sm:$0xff] }
  0x23   :  { %1158 = vmatpush1.bf16.msra.mxu1 %v1157_v37  ;;  %1160 = vmatprep.subr.bf16.mxu0 %v1159_v38  ;;  %v1175_v23 = vpack.c.bf16 %v98_v18, %v90_v17  ;;  %v97_v25 = vld [vmem:[%s2205_s1 + $0x260] sm:$0xff]  ;;  %v91_v26 = vld [vmem:[%s2205_s1 + $0x230] sm:$0xff]  ;;  %v1207_v27 = vpack.c.bf16 %v100_v20, %v92_v19  ;;  %v106_v29 = vld [vmem:[%s2205_s1 + $0x2a8] sm:$0xff] }
  0x24   :  { %1192 = vmatprep.subr.bf16.mxu1 %v1191_v42  ;;  %v99_v28 = vld [vmem:[%s2205_s1 + $0x270] sm:$0xff]  ;;  %v114_v30 = vld [vmem:[%s2205_s1 + $0x2e8] sm:$0xff]  ;;  %v108_v31 = vld [vmem:[%s2205_s1 + $0x2b8] sm:$0xff]  ;;  %v1177_v33 = vpack.c.bf16 %v97_v25, %v89_v24 }
  0x25   :  { %214 = vmatmul.mubr.f32.vlgmr.msra.gmra.mrb[0].mxu0 %v1618_v48  ;;  %v116_v32 = vld [vmem:[%s2205_s1 + $0x2f8] sm:$0xff]  ;;  %v1209_v34 = vpack.c.bf16 %v99_v28, %v91_v26  ;;  %v1179_v35 = vpack.c.bf16 %v114_v30, %v106_v29  ;;  %v105_v36 = vld [vmem:[%s2205_s1 + $0x2a0] sm:$0xff]  ;;  %v107_v38 = vld [vmem:[%s2205_s1 + $0x2b0] sm:$0xff] }
  0x26   :  { %285 = vmatmul.mubr.f32.vlgmr.msra.gmra.mrb[0].mxu1 %v1618_v48  ;;  %1162 = vmatpush1.bf16.msra.mxu0 %v1161_v49  ;;  %v113_v37 = vld [vmem:[%s2205_s1 + $0x2e0] sm:$0xff]  ;;  %v1211_v39 = vpack.c.bf16 %v116_v32, %v108_v31  ;;  %v115_v40 = vld [vmem:[%s2205_s1 + $0x2f0] sm:$0xff]  ;;  %v122_v41 = vld [vmem:[%s2205_s1 + $0x328] sm:$0xff] }
  0x27   :  { %1194 = vmatpush1.bf16.msra.mxu1 %v1193_v50  ;;  %1164 = vmatprep.subr.bf16.mxu0 %v1163_v51  ;;  %v130_v42 = vld [vmem:[%s2205_s1 + $0x368] sm:$0xff]  ;;  %v124_v43 = vld [vmem:[%s2205_s1 + $0x338] sm:$0xff]  ;;  %v1181_v45 = vpack.c.bf16 %v113_v37, %v105_v36  ;;  %v1213_v46 = vpack.c.bf16 %v115_v40, %v107_v38  ;;  %v121_v49 = vld [vmem:[%s2205_s1 + $0x320] sm:$0xff] }
  0x28   :  { %1196 = vmatprep.subr.bf16.mxu1 %v1195_v55  ;;  %355 = vmatprep.mubr.f32.mxu0 %v1354_v3  ;;  %v132_v44 = vld [vmem:[%s2205_s1 + $0x378] sm:$0xff]  ;;  %v1183_v47 = vpack.c.bf16 %v130_v42, %v122_v41  ;;  %v129_v50 = vld [vmem:[%s2205_s1 + $0x360] sm:$0xff]  ;;  %v123_v51 = vld [vmem:[%s2205_s1 + $0x330] sm:$0xff] }
  0x29   :  { %426 = vmatprep.mubr.f32.mxu1 %v1354_v3  ;;  %v1203_v3 = vpack.c.bf16 %v84_v9, %v76_v8  ;;  %v1215_v52 = vpack.c.bf16 %v132_v44, %v124_v43  ;;  %v131_v53 = vld [vmem:[%s2205_s1 + $0x370] sm:$0xff]  ;;  %v138_v54 = vld [vmem:[%s2205_s1 + $0x3a8] sm:$0xff]  ;;  %v140_v56 = vld [vmem:[%s2205_s1 + $0x3b8] sm:$0xff]  ;;  %v1185_v58 = vpack.c.bf16 %v129_v50, %v121_v49 }
  0x2a   :  { %1166 = vmatpush1.bf16.msra.mxu0 %v1165_v61  ;;  %v146_v55 = vld [vmem:[%s2205_s1 + $0x3e8] sm:$0xff]  ;;  %v148_v57 = vld [vmem:[%s2205_s1 + $0x3f8] sm:$0xff]  ;;  %v1217_v59 = vpack.c.bf16 %v131_v53, %v123_v51  ;;  %v137_v61 = vld [vmem:[%s2205_s1 + $0x3a0] sm:$0xff] }
  0x2b   :  { %1198 = vmatpush1.bf16.msra.mxu1 %v1197_v62  ;;  %1168 = vmatprep.subr.bf16.mxu0 %v1167_v63  ;;  %v1187_v60 = vpack.c.bf16 %v146_v55, %v138_v54  ;;  %v145_v62 = vld [vmem:[%s2205_s1 + $0x3e0] sm:$0xff]  ;;  %v139_v63 = vld [vmem:[%s2205_s1 + $0x3b0] sm:$0xff]  ;;  %v1219_v0 = vpack.c.bf16 %v148_v57, %v140_v56  ;;  %v590_v6 = vld [vmem:[%s2207_s4 + $0x188] sm:$0xff] }
  0x2c   :  { %1200 = vmatprep.subr.bf16.mxu1 %v1199_v4  ;;  %v147_v1 = vld [vmem:[%s2205_s1 + $0x3f0] sm:$0xff]  ;;  %v557_v2 = vld [vmem:[%s2207_s4 + $0x80] sm:$0xff]  ;;  %v558_v4 = vld [vmem:[%s2207_s4 + $0x88] sm:$0xff]  ;;  %v1189_v7 = vpack.c.bf16 %v145_v62, %v137_v61 }
  0x2d   :  { %v589_v5 = vld [vmem:[%s2207_s4 + $0x180] sm:$0xff]  ;;  %v1221_v8 = vpack.c.bf16 %v147_v1, %v139_v63  ;;  %v1223_v9 = vpack.c.bf16 %v558_v4, %v557_v2  ;;  %v574_v14 = vld [vmem:[%s2207_s4 + $0x108] sm:$0xff]  ;;  %v559_v15 = vld [vmem:[%s2207_s4 + $0x90] sm:$0xff] }
  0x2e   :  { %1170 = vmatpush1.bf16.msra.mxu0 %v1169_v10  ;;  %v541_v10 = vld [vmem:[%s2207_s4] sm:$0xff]  ;;  %v1255_v13 = vpack.c.bf16 %v590_v6, %v589_v5  ;;  %v591_v16 = vld [vmem:[%s2207_s4 + $0x190] sm:$0xff]  ;;  %v592_v17 = vld [vmem:[%s2207_s4 + $0x198] sm:$0xff] }
  0x2f   :  { %1202 = vmatpush1.bf16.msra.mxu1 %v1201_v11  ;;  %1172 = vmatprep.subr.bf16.mxu0 %v1171_v12  ;;  %v542_v11 = vld [vmem:[%s2207_s4 + $0x8] sm:$0xff]  ;;  %v573_v12 = vld [vmem:[%s2207_s4 + $0x100] sm:$0xff]  ;;  %v1259_v24 = vpack.c.bf16 %v592_v17, %v591_v16  ;;  %v576_v25 = vld [vmem:[%s2207_s4 + $0x118] sm:$0xff] }
  0x30   :  { %1204 = vmatprep.subr.bf16.mxu1 %v1203_v3  ;;  %v560_v3 = vld [vmem:[%s2207_s4 + $0x98] sm:$0xff]  ;;  %v1225_v18 = vpack.c.bf16 %v542_v11, %v541_v10  ;;  %v1257_v19 = vpack.c.bf16 %v574_v14, %v573_v12  ;;  %v561_v26 = vld [vmem:[%s2207_s4 + $0xa0] sm:$0xff]  ;;  %v594_v29 = vld [vmem:[%s2207_s4 + $0x1a8] sm:$0xff] }
  0x31   :  { %v1227_v20 = vpack.c.bf16 %v560_v3, %v559_v15  ;;  %v593_v28 = vld [vmem:[%s2207_s4 + $0x1a0] sm:$0xff]  ;;  %v578_v36 = vld [vmem:[%s2207_s4 + $0x128] sm:$0xff]  ;;  %v563_v37 = vld [vmem:[%s2207_s4 + $0xb0] sm:$0xff] }
  0x32   :  { %1174 = vmatpush1.bf16.msra.mxu0 %v1173_v21  ;;  %v543_v21 = vld [vmem:[%s2207_s4 + $0x10] sm:$0xff]  ;;  %v564_v38 = vld [vmem:[%s2207_s4 + $0xb8] sm:$0xff]  ;;  %v565_v50 = vld [vmem:[%s2207_s4 + $0xc0] sm:$0xff] }
  0x33   :  { %1206 = vmatpush1.bf16.msra.mxu1 %v1205_v22  ;;  %1176 = vmatprep.subr.bf16.mxu0 %v1175_v23  ;;  %v544_v22 = vld [vmem:[%s2207_s4 + $0x18] sm:$0xff]  ;;  %v575_v23 = vld [vmem:[%s2207_s4 + $0x110] sm:$0xff]  ;;  %v1235_v43 = vpack.c.bf16 %v564_v38, %v563_v37  ;;  %v566_v51 = vld [vmem:[%s2207_s4 + $0xc8] sm:$0xff] }
  0x34   :  { %1208 = vmatprep.subr.bf16.mxu1 %v1207_v27  ;;  %v562_v27 = vld [vmem:[%s2207_s4 + $0xa8] sm:$0xff]  ;;  %v1229_v30 = vpack.c.bf16 %v544_v22, %v543_v21  ;;  %v1261_v31 = vpack.c.bf16 %v576_v25, %v575_v23  ;;  %v596_v40 = vld [vmem:[%s2207_s4 + $0x1b8] sm:$0xff]  ;;  %v547_v44 = vld [vmem:[%s2207_s4 + $0x30] sm:$0xff]  ;;  %v1239_v56 = vpack.c.bf16 %v566_v51, %v565_v50 }
  0x35   :  { %v1231_v32 = vpack.c.bf16 %v562_v27, %v561_v26  ;;  %v580_v49 = vld [vmem:[%s2207_s4 + $0x138] sm:$0xff]  ;;  %v598_v53 = vld [vmem:[%s2207_s4 + $0x1c8] sm:$0xff]  ;;  %v549_v57 = vld [vmem:[%s2207_s4 + $0x40] sm:$0xff] }
  0x36   :  { %1178 = vmatpush1.bf16.msra.mxu0 %v1177_v33  ;;  %v545_v33 = vld [vmem:[%s2207_s4 + $0x20] sm:$0xff]  ;;  %v582_v61 = vld [vmem:[%s2207_s4 + $0x148] sm:$0xff]  ;;  %v567_v62 = vld [vmem:[%s2207_s4 + $0xd0] sm:$0xff] }
  0x37   :  { %1210 = vmatpush1.bf16.msra.mxu1 %v1209_v34  ;;  %1180 = vmatprep.subr.bf16.mxu0 %v1179_v35  ;;  %v546_v34 = vld [vmem:[%s2207_s4 + $0x28] sm:$0xff]  ;;  %v577_v35 = vld [vmem:[%s2207_s4 + $0x120] sm:$0xff]  ;;  %v568_v63 = vld [vmem:[%s2207_s4 + $0xd8] sm:$0xff] }
  0x38   :  { %1212 = vmatprep.subr.bf16.mxu1 %v1211_v39  ;;  %v595_v39 = vld [vmem:[%s2207_s4 + $0x1b0] sm:$0xff]  ;;  %v1233_v41 = vpack.c.bf16 %v546_v34, %v545_v33  ;;  %v1265_v42 = vpack.c.bf16 %v578_v36, %v577_v35  ;;  %v600_v1 = vld [vmem:[%s2207_s4 + $0x1d8] sm:$0xff]  ;;  %v1243_v5 = vpack.c.bf16 %v568_v63, %v567_v62  ;;  %v570_v14 = vld [vmem:[%s2207_s4 + $0xe8] sm:$0xff] }
  0x39   :  { %v551_v6 = vld [vmem:[%s2207_s4 + $0x50] sm:$0xff]  ;;  %v584_v10 = vld [vmem:[%s2207_s4 + $0x158] sm:$0xff]  ;;  %v601_v15 = vld [vmem:[%s2207_s4 + $0x1e0] sm:$0xff] }
  0x3a   :  { %1182 = vmatpush1.bf16.msra.mxu0 %v1181_v45  ;;  %v548_v45 = vld [vmem:[%s2207_s4 + $0x38] sm:$0xff]  ;;  %v602_v16 = vld [vmem:[%s2207_s4 + $0x1e8] sm:$0xff]  ;;  %v553_v17 = vld [vmem:[%s2207_s4 + $0x60] sm:$0xff] }
  0x3b   :  { %1214 = vmatpush1.bf16.msra.mxu1 %v1213_v46  ;;  %1184 = vmatprep.subr.bf16.mxu0 %v1183_v47  ;;  %v579_v46 = vld [vmem:[%s2207_s4 + $0x130] sm:$0xff]  ;;  %v1267_v47 = vpack.c.bf16 %v596_v40, %v595_v39  ;;  %v1237_v54 = vpack.c.bf16 %v548_v45, %v547_v44  ;;  %v586_v22 = vld [vmem:[%s2207_s4 + $0x168] sm:$0xff]  ;;  %v572_v25 = vld [vmem:[%s2207_s4 + $0xf8] sm:$0xff] }
  0x3c   :  { %1216 = vmatprep.subr.bf16.mxu1 %v1215_v52  ;;  %v597_v52 = vld [vmem:[%s2207_s4 + $0x1c0] sm:$0xff]  ;;  %v1269_v55 = vpack.c.bf16 %v580_v49, %v579_v46  ;;  %v603_v26 = vld [vmem:[%s2207_s4 + $0x1f0] sm:$0xff]  ;;  %v588_v34 = vld [vmem:[%s2207_s4 + $0x178] sm:$0xff] }
  0x3d   :  { %v587_v33 = vld [vmem:[%s2207_s4 + $0x170] sm:$0xff]  ;;  %v622_v36 = vld [vmem:[%s2207_s4 + $0x288] sm:$0xff]  ;;  %v653_v37 = vld [vmem:[%s2207_s4 + $0x380] sm:$0xff] }
  0x3e   :  { %1186 = vmatpush1.bf16.msra.mxu0 %v1185_v58  ;;  %v550_v58 = vld [vmem:[%s2207_s4 + $0x48] sm:$0xff]  ;;  %v1285_v35 = vpack.c.bf16 %v588_v34, %v587_v33  ;;  %v1992_v44 = vld [vmem:[%s2208_s2] sm:$0xff] }
  0x3f   :  { %1218 = vmatpush1.bf16.msra.mxu1 %v1217_v59  ;;  %1188 = vmatprep.subr.bf16.mxu0 %v1187_v60  ;;  %v581_v59 = vld [vmem:[%s2207_s4 + $0x140] sm:$0xff]  ;;  %v1271_v60 = vpack.c.bf16 %v598_v53, %v597_v52  ;;  %v1241_v2 = vpack.c.bf16 %v550_v58, %v549_v57  ;;  %v654_v39 = vld [vmem:[%s2207_s4 + $0x388] sm:$0xff] }
  0x40   :  { %1220 = vmatprep.subr.bf16.mxu1 %v1219_v0  ;;  %v599_v0 = vld [vmem:[%s2207_s4 + $0x1d0] sm:$0xff]  ;;  %v1273_v4 = vpack.c.bf16 %v582_v61, %v581_v59  ;;  %v1319_v40 = vpack.c.bf16 %v654_v39, %v653_v37  ;;  %v2000_v49 = vld [vmem:[%s2209_s3] sm:$0xff]  ;;  %v610_v34 = vld [vmem:[%s2207_s4 + $0x228] sm:$0xff] }
  0x41   :  { %v609_v33 = vld [vmem:[%s2207_s4 + $0x220] sm:$0xff]  ;;  %v627_v37 = vld [vmem:[%s2207_s4 + $0x2b0] sm:$0xff] }
  0x42   :  { %1190 = vmatpush1.bf16.msra.mxu0 %v1189_v7  ;;  %v552_v7 = vld [vmem:[%s2207_s4 + $0x58] sm:$0xff]  ;;  %v659_v39 = vld [vmem:[%s2207_s4 + $0x3b0] sm:$0xff] }
  0x43   :  { %1222 = vmatpush1.bf16.msra.mxu1 %v1221_v8  ;;  %1224 = vmatprep.subr.bf16.mxu0 %v1223_v9  ;;  %v1275_v8 = vpack.c.bf16 %v600_v1, %v599_v0  ;;  %v583_v9 = vld [vmem:[%s2207_s4 + $0x150] sm:$0xff]  ;;  %v1245_v11 = vpack.c.bf16 %v552_v7, %v551_v6  ;;  %v637_v6 = vld [vmem:[%s2207_s4 + $0x300] sm:$0xff] }
  0x44   :  { %1256 = vmatprep.subr.bf16.mxu1 %v1255_v13  ;;  %v1277_v12 = vpack.c.bf16 %v584_v10, %v583_v9  ;;  %v569_v13 = vld [vmem:[%s2207_s4 + $0xe0] sm:$0xff]  ;;  %v638_v9 = vld [vmem:[%s2207_s4 + $0x308] sm:$0xff]  ;;  %v623_v10 = vld [vmem:[%s2207_s4 + $0x290] sm:$0xff] }
  0x45   :  { %356 = vmatmul.mubr.f32.vlgmr.msra.gmra.mrb[2].mxu0 %v1618_v48  ;;  %v1247_v3 = vpack.c.bf16 %v570_v14, %v569_v13  ;;  %v655_v14 = vld [vmem:[%s2207_s4 + $0x390] sm:$0xff] }
  0x46   :  { %427 = vmatmul.mubr.f32.vlgmr.msra.gmra.mrb[2].mxu1 %v1618_v48  ;;  %1226 = vmatpush3.bf16.msra.mxu0 %v1225_v18  ;;  %v1263_v48 = vpack.c.bf16 %v594_v29, %v593_v28  ;;  %v1279_v18 = vpack.c.bf16 %v602_v16, %v601_v15  ;;  %v604_v28 = vld [vmem:[%s2207_s4 + $0x1f8] sm:$0xff]  ;;  %v555_v29 = vld [vmem:[%s2207_s4 + $0x70] sm:$0xff] }
  0x47   :  { %1258 = vmatpush3.bf16.msra.mxu1 %v1257_v19  ;;  %1228 = vmatprep.subr.bf16.mxu0 %v1227_v20  ;;  %v554_v19 = vld [vmem:[%s2207_s4 + $0x68] sm:$0xff]  ;;  %v585_v20 = vld [vmem:[%s2207_s4 + $0x160] sm:$0xff]  ;;  %v656_v15 = vld [vmem:[%s2207_s4 + $0x398] sm:$0xff] }
  0x48   :  { %1260 = vmatprep.subr.bf16.mxu1 %v1259_v24  ;;  %v1249_v21 = vpack.c.bf16 %v554_v19, %v553_v17  ;;  %v1281_v23 = vpack.c.bf16 %v586_v22, %v585_v20  ;;  %v571_v24 = vld [vmem:[%s2207_s4 + $0xf0] sm:$0xff]  ;;  %v1321_v19 = vpack.c.bf16 %v638_v9, %v637_v6  ;;  %v608_v22 = vld [vmem:[%s2207_s4 + $0x218] sm:$0xff] }
  0x49   :  { %v1251_v27 = vpack.c.bf16 %v572_v25, %v571_v24  ;;  %v1323_v24 = vpack.c.bf16 %v656_v15, %v655_v14  ;;  %v640_v25 = vld [vmem:[%s2207_s4 + $0x318] sm:$0xff]  ;;  %v615_v9 = vld [vmem:[%s2207_s4 + $0x250] sm:$0xff]  ;;  %v633_v14 = vld [vmem:[%s2207_s4 + $0x2e0] sm:$0xff] }
  0x4a   :  { %1230 = vmatpush3.bf16.msra.mxu0 %v1229_v30  ;;  %v556_v30 = vld [vmem:[%s2207_s4 + $0x78] sm:$0xff]  ;;  %v634_v15 = vld [vmem:[%s2207_s4 + $0x2e8] sm:$0xff] }
  0x4b   :  { %1262 = vmatpush3.bf16.msra.mxu1 %v1261_v31  ;;  %1232 = vmatprep.subr.bf16.mxu0 %v1231_v32  ;;  %v1283_v31 = vpack.c.bf16 %v604_v28, %v603_v26  ;;  %v1253_v32 = vpack.c.bf16 %v556_v30, %v555_v29  ;;  %v625_v26 = vld [vmem:[%s2207_s4 + $0x2a0] sm:$0xff]  ;;  %v658_v29 = vld [vmem:[%s2207_s4 + $0x3a8] sm:$0xff] }
  0x4c   :  { %1264 = vmatprep.subr.bf16.mxu1 %v1263_v48  ;;  %v621_v48 = vld [vmem:[%s2207_s4 + $0x280] sm:$0xff] }
  0x4d   :  { %v1287_v38 = vpack.c.bf16 %v622_v36, %v621_v48  ;;  %v657_v28 = vld [vmem:[%s2207_s4 + $0x3a0] sm:$0xff]  ;;  %v642_v36 = vld [vmem:[%s2207_s4 + $0x328] sm:$0xff] }
  0x4e   :  { %1234 = vmatpush3.bf16.msra.mxu0 %v1233_v41  ;;  %v435_v41 = vlaneseq  ;;  %v1327_v48 = vpack.c.bf16 %v658_v29, %v657_v28  ;;  %v650_v28 = vld [vmem:[%s2207_s4 + $0x368] sm:$0xff]  ;;  %v636_v29 = vld [vmem:[%s2207_s4 + $0x2f8] sm:$0xff] }
  0x4f   :  { %1266 = vmatpush3.bf16.msra.mxu1 %v1265_v42  ;;  %1236 = vmatprep.subr.bf16.mxu0 %v1235_v43 }
  0x50   :  { %1268 = vmatprep.subr.bf16.mxu1 %v1267_v47  ;;  %v1986_v42 = vshrl.u32 %v435_v41, 7  ;;  %v1297_v41 = vpack.c.bf16 %v610_v34, %v609_v33 }
  0x52   :  { %1238 = vmatpush3.bf16.msra.mxu0 %v1237_v54  ;;  %v437_v43 = vsub.s32 0, %v1986_v42  ;;  %v445_v45 = vsub.s32 2, %v1986_v42  ;;  %v441_v46 = vsub.s32 1, %v1986_v42  ;;  %v449_v47 = vsub.s32 3, %v1986_v42 }
  0x53   :  { %1270 = vmatpush3.bf16.msra.mxu1 %v1269_v55  ;;  %1240 = vmatprep.subr.bf16.mxu0 %v1239_v56 }
  0x54   :  { %1272 = vmatprep.subr.bf16.mxu1 %v1271_v60  ;;  %v438_v50 = vrot.slane %v1992_v44, %v437_v43  ;;  %v446_v51 = vrot.slane %v1992_v44, %v445_v45  ;;  %v442_v52 = vrot.slane %v1992_v44, %v441_v46  ;;  %v488_v53 = vrot.slane %v2000_v49, %v437_v43 }
  0x55   :  { %v450_v54 = vrot.slane %v1992_v44, %v449_v47  ;;  %v496_v56 = vrot.slane %v2000_v49, %v445_v45  ;;  %v492_v57 = vrot.slane %v2000_v49, %v441_v46  ;;  %v500_v61 = vrot.slane %v2000_v49, %v449_v47  ;;  %v611_v46 = vld [vmem:[%s2207_s4 + $0x230] sm:$0xff]  ;;  %v612_v47 = vld [vmem:[%s2207_s4 + $0x238] sm:$0xff] }
  0x56   :  { %1242 = vmatpush3.bf16.msra.mxu0 %v1241_v2 }
  0x57   :  { %1274 = vmatpush3.bf16.msra.mxu1 %v1273_v4  ;;  %1244 = vmatprep.subr.bf16.mxu0 %v1243_v5  ;;  %v605_v4 = vld [vmem:[%s2207_s4 + $0x200] sm:$0xff]  ;;  %v606_v5 = vld [vmem:[%s2207_s4 + $0x208] sm:$0xff] }
  0x58   :  { %1276 = vmatprep.subr.bf16.mxu1 %v1275_v8  ;;  %v1289_v17 = vpack.c.bf16 %v606_v5, %v605_v4  ;;  %v663_v4 = vld [vmem:[%s2207_s4 + $0x3d0] sm:$0xff]  ;;  %v664_v5 = vld [vmem:[%s2207_s4 + $0x3d8] sm:$0xff] }
  0x5a   :  { %1246 = vmatpush3.bf16.msra.mxu0 %v1245_v11  ;;  %v624_v11 = vld [vmem:[%s2207_s4 + $0x298] sm:$0xff] }
  0x5b   :  { %1278 = vmatpush3.bf16.msra.mxu1 %v1277_v12  ;;  %1248 = vmatprep.subr.bf16.mxu0 %v1247_v3  ;;  %v1291_v20 = vpack.c.bf16 %v624_v11, %v623_v10  ;;  %v616_v10 = vld [vmem:[%s2207_s4 + $0x258] sm:$0xff]  ;;  %v647_v11 = vld [vmem:[%s2207_s4 + $0x350] sm:$0xff] }
  0x5c   :  { %1280 = vmatprep.subr.bf16.mxu1 %v1279_v18 }
  0x5e   :  { %1250 = vmatpush3.bf16.msra.mxu0 %v1249_v21  ;;  %v607_v21 = vld [vmem:[%s2207_s4 + $0x210] sm:$0xff] }
  0x5f   :  { %1282 = vmatpush3.bf16.msra.mxu1 %v1281_v23  ;;  %1252 = vmatprep.subr.bf16.mxu0 %v1251_v27  ;;  %v639_v23 = vld [vmem:[%s2207_s4 + $0x310] sm:$0xff]  ;;  %v626_v27 = vld [vmem:[%s2207_s4 + $0x2a8] sm:$0xff]  ;;  %v1293_v30 = vpack.c.bf16 %v608_v22, %v607_v21  ;;  %v465_v22 = vsub.s32 7, %v1986_v42 }
  0x60   :  { %1284 = vmatprep.subr.bf16.mxu1 %v1283_v31  ;;  %v1325_v31 = vpack.c.bf16 %v640_v25, %v639_v23  ;;  %v1311_v23 = vpack.c.bf16 %v634_v15, %v633_v14  ;;  %v618_v25 = vld [vmem:[%s2207_s4 + $0x268] sm:$0xff] }
  0x62   :  { %1254 = vmatpush3.bf16.msra.mxu0 %v1253_v32  ;;  %v1295_v32 = vpack.c.bf16 %v626_v27, %v625_v26  ;;  %v649_v26 = vld [vmem:[%s2207_s4 + $0x360] sm:$0xff] }
  0x63   :  { %1286 = vmatpush3.bf16.msra.mxu1 %v1285_v35  ;;  %1288 = vmatprep.subr.bf16.mxu0 %v1287_v38  ;;  %v641_v35 = vld [vmem:[%s2207_s4 + $0x320] sm:$0xff]  ;;  %v628_v38 = vld [vmem:[%s2207_s4 + $0x2b8] sm:$0xff] }
  0x64   :  { %1320 = vmatprep.subr.bf16.mxu1 %v1319_v40  ;;  %v660_v40 = vld [vmem:[%s2207_s4 + $0x3b8] sm:$0xff]  ;;  %v1329_v43 = vpack.c.bf16 %v642_v36, %v641_v35  ;;  %v1299_v45 = vpack.c.bf16 %v628_v38, %v627_v37  ;;  %v466_v36 = vrot.slane %v1992_v44, %v465_v22  ;;  %v1345_v37 = vpack.c.bf16 %v650_v28, %v649_v26 }
  0xf8   :  { %v215_v55 = vpop.f32.mrb[0].mxu0 }
  0xf9   :  { %v475_v58 = vmul.f32 %v438_v50, %v215_v55  ;;  %v286_v59 = vpop.f32.mrb[0].mxu1  ;;  %v217_v60 = vpop.f32.mrb[1].mxu0  ;;  %v643_v50 = vld [vmem:[%s2207_s4 + $0x330] sm:$0xff]  ;;  %v661_v55 = vld [vmem:[%s2207_s4 + $0x3c0] sm:$0xff] }
  0xfa   :  { %v477_v62 = vmul.f32 %v446_v51, %v286_v59  ;;  %v476_v63 = vmul.f32 %v442_v52, %v217_v60  ;;  %v288_v0 = vpop.f32.mrb[1].mxu1  ;;  %v1331_v51 = vpack.c.bf16 %v660_v40, %v659_v39  ;;  %v644_v52 = vld [vmem:[%s2207_s4 + $0x338] sm:$0xff]  ;;  %v613_v60 = vld [vmem:[%s2207_s4 + $0x240] sm:$0xff]  ;;  %v619_v39 = vld [vmem:[%s2207_s4 + $0x270] sm:$0xff] }
  0xfb   :  { %v525_v1 = vadd.f32 %v488_v53, %v475_v58  ;;  %v478_v2 = vmul.f32 %v450_v54, %v288_v0  ;;  %v629_v53 = vld [vmem:[%s2207_s4 + $0x2c0] sm:$0xff]  ;;  %v630_v54 = vld [vmem:[%s2207_s4 + $0x2c8] sm:$0xff]  ;;  %v1333_v58 = vpack.c.bf16 %v644_v52, %v643_v50  ;;  %v620_v40 = vld [vmem:[%s2207_s4 + $0x278] sm:$0xff] }
  0xfc   :  { %v527_v7 = vadd.f32 %v496_v56, %v477_v62  ;;  %v526_v8 = vadd.f32 %v492_v57, %v476_v63  ;;  %v662_v56 = vld [vmem:[%s2207_s4 + $0x3c8] sm:$0xff]  ;;  %v1301_v57 = vpack.c.bf16 %v612_v47, %v611_v46  ;;  %v1303_v59 = vpack.c.bf16 %v630_v54, %v629_v53  ;;  %v645_v62 = vld [vmem:[%s2207_s4 + $0x340] sm:$0xff]  ;;  %v652_v47 = vld [vmem:[%s2207_s4 + $0x378] sm:$0xff] }
  0xfd   :  { %v533_v12 = vmax.f32 %v525_v1, 0.0  ;;  %v528_v13 = vadd.f32 %v500_v61, %v478_v2  ;;  %v614_v61 = vld [vmem:[%s2207_s4 + $0x248] sm:$0xff]  ;;  %v1335_v63 = vpack.c.bf16 %v662_v56, %v661_v55  ;;  %v631_v1 = vld [vmem:[%s2207_s4 + $0x2d0] sm:$0xff]  ;;  %v632_v2 = vld [vmem:[%s2207_s4 + $0x2d8] sm:$0xff]  ;;  %v516_v53 = vrot.slane %v2000_v49, %v465_v22 }
  0xfe   :  { %v535_v3 = vmax.f32 %v527_v7, 0.0  ;;  %v534_v16 = vmax.f32 %v526_v8, 0.0  ;;  %v646_v0 = vld [vmem:[%s2207_s4 + $0x348] sm:$0xff]  ;;  %v1305_v6 = vpack.c.bf16 %v614_v61, %v613_v60  ;;  %v1307_v8 = vpack.c.bf16 %v632_v2, %v631_v1 }
  0xff   :  { %v536_v18 = vmax.f32 %v528_v13, 0.0  ;;  %v1337_v7 = vpack.c.bf16 %v646_v0, %v645_v62  ;;  %v648_v13 = vld [vmem:[%s2207_s4 + $0x358] sm:$0xff] }
 0x100   :  { %733 = vmatprep.mubr.f32.mxu0 %v534_v16  ;;  %v665_v16 = vld [vmem:[%s2207_s4 + $0x3e0] sm:$0xff]  ;;  %v1341_v21 = vpack.c.bf16 %v648_v13, %v647_v11 }
 0x101   :  { %803 = vmatprep.mubr.f32.mxu1 %v536_v18  ;;  %734 = vmatmul.mubr.f32.vlgmr.msra.gmra.mrb[4].mxu0 %v533_v12  ;;  %v1339_v12 = vpack.c.bf16 %v664_v5, %v663_v4  ;;  %v1309_v18 = vpack.c.bf16 %v616_v10, %v615_v9 }
 0x102   :  { %804 = vmatmul.mubr.f32.vlgmr.msra.gmra.mrb[4].mxu1 %v535_v3  ;;  %1290 = vmatpush3.bf16.msra.mxu0 %v1289_v17  ;;  %v453_v3 = vsub.s32 4, %v1986_v42  ;;  %v666_v17 = vld [vmem:[%s2207_s4 + $0x3e8] sm:$0xff] }
 0x103   :  { %1322 = vmatpush3.bf16.msra.mxu1 %v1321_v19  ;;  %1292 = vmatprep.subr.bf16.mxu0 %v1291_v20  ;;  %v461_v19 = vsub.s32 6, %v1986_v42  ;;  %v457_v20 = vsub.s32 5, %v1986_v42  ;;  %v1343_v27 = vpack.c.bf16 %v666_v17, %v665_v16  ;;  %v635_v42 = vld [vmem:[%s2207_s4 + $0x2f0] sm:$0xff] }
 0x104   :  { %1324 = vmatprep.subr.bf16.mxu1 %v1323_v24  ;;  %v617_v24 = vld [vmem:[%s2207_s4 + $0x260] sm:$0xff]  ;;  %v504_v33 = vrot.slane %v2000_v49, %v453_v3  ;;  %v1315_v38 = vpack.c.bf16 %v636_v29, %v635_v42 }
 0x105   :  { %v462_v34 = vrot.slane %v1992_v44, %v461_v19  ;;  %v458_v35 = vrot.slane %v1992_v44, %v457_v20 }
 0x106   :  { %1294 = vmatpush3.bf16.msra.mxu0 %v1293_v30  ;;  %v454_v30 = vrot.slane %v1992_v44, %v453_v3  ;;  %v651_v44 = vld [vmem:[%s2207_s4 + $0x370] sm:$0xff] }
 0x107   :  { %1326 = vmatpush3.bf16.msra.mxu1 %v1325_v31  ;;  %1296 = vmatprep.subr.bf16.mxu0 %v1295_v32  ;;  %v667_v31 = vld [vmem:[%s2207_s4 + $0x3f0] sm:$0xff]  ;;  %v668_v32 = vld [vmem:[%s2207_s4 + $0x3f8] sm:$0xff]  ;;  %v1349_v60 = vpack.c.bf16 %v652_v47, %v651_v44 }
 0x108   :  { %1328 = vmatprep.subr.bf16.mxu1 %v1327_v48  ;;  %v1313_v48 = vpack.c.bf16 %v618_v25, %v617_v24  ;;  %v1347_v46 = vpack.c.bf16 %v668_v32, %v667_v31 }
 0x10a   :  { %1298 = vmatpush3.bf16.msra.mxu0 %v1297_v41 }
 0x10b   :  { %1330 = vmatpush3.bf16.msra.mxu1 %v1329_v43  ;;  %1300 = vmatprep.subr.bf16.mxu0 %v1299_v45  ;;  %v512_v43 = vrot.slane %v2000_v49, %v461_v19  ;;  %v508_v45 = vrot.slane %v2000_v49, %v457_v20 }
 0x10c   :  { %1332 = vmatprep.subr.bf16.mxu1 %v1331_v51 }
 0x10e   :  { %1302 = vmatpush3.bf16.msra.mxu0 %v1301_v57  ;;  %v1317_v57 = vpack.c.bf16 %v620_v40, %v619_v39 }
 0x10f   :  { %1334 = vmatpush3.bf16.msra.mxu1 %v1333_v58  ;;  %1304 = vmatprep.subr.bf16.mxu0 %v1303_v59 }
 0x110   :  { %1336 = vmatprep.subr.bf16.mxu1 %v1335_v63 }
 0x112   :  { %1306 = vmatpush3.bf16.msra.mxu0 %v1305_v6 }
 0x113   :  { %1338 = vmatpush3.bf16.msra.mxu1 %v1337_v7  ;;  %1308 = vmatprep.subr.bf16.mxu0 %v1307_v8 }
 0x114   :  { %1340 = vmatprep.subr.bf16.mxu1 %v1339_v12 }
 0x116   :  { %1310 = vmatpush3.bf16.msra.mxu0 %v1309_v18 }
 0x117   :  { %1342 = vmatpush3.bf16.msra.mxu1 %v1341_v21  ;;  %1312 = vmatprep.subr.bf16.mxu0 %v1311_v23 }
 0x118   :  { %v357_v41 = vpop.f32.mrb[2].mxu0  ;;  %1344 = vmatprep.subr.bf16.mxu1 %v1343_v27 }
 0x119   :  { %v479_v50 = vmul.f32 %v454_v30, %v357_v41  ;;  %v428_v51 = vpop.f32.mrb[2].mxu1  ;;  %v359_v52 = vpop.f32.mrb[3].mxu0 }
 0x11a   :  { %v481_v54 = vmul.f32 %v462_v34, %v428_v51  ;;  %v480_v55 = vmul.f32 %v458_v35, %v359_v52  ;;  %v430_v56 = vpop.f32.mrb[3].mxu1  ;;  %1314 = vmatpush3.bf16.msra.mxu0 %v1313_v48 }
 0x11b   :  { %v529_v58 = vadd.f32 %v504_v33, %v479_v50  ;;  %v482_v59 = vmul.f32 %v466_v36, %v430_v56  ;;  %1346 = vmatpush3.bf16.msra.mxu1 %v1345_v37  ;;  %1316 = vmatprep.subr.bf16.mxu0 %v1315_v38 }
 0x11c   :  { %v531_v61 = vadd.f32 %v512_v43, %v481_v54  ;;  %v530_v62 = vadd.f32 %v508_v45, %v480_v55  ;;  %1348 = vmatprep.subr.bf16.mxu1 %v1347_v46 }
 0x11d   :  { %v532_v63 = vadd.f32 %v516_v53, %v482_v59  ;;  %v537_v2 = vmax.f32 %v529_v58, 0.0 }
 0x11e   :  { %v539_v0 = vmax.f32 %v531_v61, 0.0  ;;  %v538_v1 = vmax.f32 %v530_v62, 0.0  ;;  %1318 = vmatpush3.bf16.msra.mxu0 %v1317_v57 }
 0x11f   :  { %v540_v4 = vmax.f32 %v532_v63, 0.0  ;;  %1350 = vmatpush3.bf16.msra.mxu1 %v1349_v60 }
 0x120   :  { %873 = vmatprep.mubr.f32.mxu0 %v538_v1 }
 0x121   :  { %943 = vmatprep.mubr.f32.mxu1 %v540_v4  ;;  %874 = vmatmul.mubr.f32.vlgmr.msra.gmra.mrb[6].mxu0 %v537_v2 }
 0x122   :  { %944 = vmatmul.mubr.f32.vlgmr.msra.gmra.mrb[6].mxu1 %v539_v0 }
 0x1d4   :  { %v987_v49 = vpop.f32.mrb[4].mxu0 }
 0x1d5   :  { %v1022_v5 = vpop.f32.mrb[4].mxu1  ;;  %v988_v6 = vpop.f32.mrb[5].mxu0 }
 0x1d6   :  { %v989_v7 = vadd.f32 %v988_v6, %v987_v49  ;;  %v1023_v8 = vpop.f32.mrb[5].mxu1 }
 0x1d7   :  { %v1024_v9 = vadd.f32 %v1023_v8, %v1022_v5 }
 0x1d9   :  { %v806_v10 = vadd.f32 %v1024_v9, %v989_v7 }
 0x1f4   :  { %v1057_v11 = vpop.f32.mrb[6].mxu0 }
 0x1f5   :  { %v1092_v12 = vpop.f32.mrb[6].mxu1  ;;  %v1058_v13 = vpop.f32.mrb[7].mxu0 }
 0x1f6   :  { %v1059_v14 = vadd.f32 %v1058_v13, %v1057_v11  ;;  %v1093_v15 = vpop.f32.mrb[7].mxu1 }
 0x1f7   :  { %v1094_v3 = vadd.f32 %v1093_v15, %v1092_v12 }
 0x1f8   :  { %v876_v16 = vadd.f32 %v1059_v14, %v806_v10 }
 0x1fa   :  { %v946_v17 = vadd.f32 %v1094_v3, %v876_v16 }
 0x1fc   :  { %1352 = vtanh.f32 %v946_v17 }
 0x206   :  { %v1353_v18 = vpop.eup %1352 }
 0x207   :  { %950 = vst [vmem:[%s2210_s5] sm:$0x3] %v1353_v18 }

</bundles_post_ra>
